<compile_context>
chip_gen: v7x
topology: tpu7x:2x2x1
jax: 0.10.0
libtpu: 0.0.40
codegen_flags: <defaults>
</compile_context>

<pallas_src>
import functools

import jax
import jax.numpy as jnp
from jax.experimental import pallas as pl
from jax.experimental.pallas import tpu as pltpu

LN_EPS = 1e-5   # nn.LayerNorm default eps
LANE = 128


def _vol_embed_kernel(x_ref, p_ref, out_ref, *, lookback, s_tile, win):
    """One (batch-row, S-tile) grid step.

    x_ref   : (1, 1, T_xp)   padded close prices; |xp[t+1]-xp[t]| == returns[t]
    p_ref   : (D, 6)         columns: P, Q, beta, var_w, cov_wb, var_b
    out_ref : (1, D, s_tile) transposed (lane-dense) output tile
    """
    si = pl.program_id(1)
    start = pl.multiple_of(si * s_tile, LANE)

    # Price window covering returns[start : start + s_tile + lookback - 1].
    xw = x_ref[:, :, pl.ds(start, win)]                           # (1, 1, win)

    # returns[t] = |xp[t+1] - xp[t]|  (leading zero return is built into xp).
    # roll by win-1  ==  circular shift left by 1 (XLU slot).
    ret = jnp.abs(pltpu.roll(xw, win - 1, 2) - xw)                # (1, 1, win)

    # Variance is shift-invariant: center on the tile mean before the one-pass
    # sum / sum-of-squares to reduce f32 cancellation (numerics only, ~free).
    c = jnp.mean(ret[:, :, :s_tile], axis=-1, keepdims=True)      # (1, 1, 1)
    retc = ret - c

    wsum = retc
    wsq = retc * retc
    for k in range(1, lookback):
        sh = pltpu.roll(retc, win - k, 2)                         # retc shifted left by k
        wsum = wsum + sh
        wsq = wsq + sh * sh
    # Unbiased (ddof=1) variance like torch.std; clamp tiny negative round-off.
    var_win = (wsq - wsum * wsum * (1.0 / lookback)) * (1.0 / (lookback - 1))
    vol = jnp.sqrt(jnp.maximum(var_win[:, :, :s_tile], 0.0))      # (1, 1, s_tile)

    # Closed-form LayerNorm(Linear(1, D)(vol)):  out = (vol*r)*P + r*Q + beta.
    P   = p_ref[:, 0:1][None]        # (1, D, 1)
    Q   = p_ref[:, 1:2][None]        # (1, D, 1)
    bet = p_ref[:, 2:3][None]        # (1, D, 1)
    vw  = p_ref[0:1, 3:4][None]      # (1, 1, 1)  scalars kept vector-resident
    cwb = p_ref[0:1, 4:5][None]
    vb  = p_ref[0:1, 5:6][None]

    r = jax.lax.rsqrt(vol * vol * vw + 2.0 * vol * cwb + vb + LN_EPS)
    a = vol * r
    out_ref[...] = a * P + r * Q + bet                            # (1, D, s_tile)


def volatility_embedding_compact(x_close, w, b, gamma, beta, *, lookback=11):
    """Compact (B, S, D) embedding; the module's L axis is a replicate of this."""
    assert lookback % 2 == 1, "Lookback must be odd number"
    B, T, C = x_close.shape
    assert C == 1, "channel dim must be 1 (close price)"
    D = w.shape[0]
    L = lookback
    S = T - L + 1
    assert S >= 1, "T must be >= lookback"

    # ---- tiling: S lives on the lane axis, padded to a multiple of 128. Pick
    # the largest tile dividing S_pad whose double-buffered output tile stays
    # comfortably inside the default scoped-VMEM budget (v5e 16 MiB).
    S_pad = pl.cdiv(S, LANE) * LANE
    s_tile = LANE
    for cand in (1024, 512, 256):
        if S_pad % cand == 0:
            s_tile = cand
            break
    while s_tile > LANE and 2 * D * s_tile * 4 > (8 << 20):
        s_tile //= 2

    lw = pl.cdiv(L, LANE) * LANE          # lane-aligned window overhang (>= L)
    win = s_tile + lw
    t_xp = S_pad + lw

    # xp[0] = x[0], xp[t+1] = x[t]  ->  |xp[t+1]-xp[t]| == returns[t] (incl. t=0 == 0).
    x2d = x_close[..., 0].astype(jnp.float32)                     # (B, T)
    xp = jnp.concatenate([x2d[:, :1], x2d], axis=1)               # (B, T+1)
    xp = jnp.pad(xp, ((0, 0), (0, t_xp - (T + 1))), mode="edge")
    xp3 = xp.reshape(B, 1, t_xp)

    # ---- closed-form LayerNorm constants, packed into one (D, 6) block.
    w = w.astype(jnp.float32)
    b = b.astype(jnp.float32)
    gamma = gamma.astype(jnp.float32)
    beta = beta.astype(jnp.float32)
    wc = w - jnp.mean(w)
    bc = b - jnp.mean(b)
    vw = jnp.mean(wc * wc)
    cwb = jnp.mean(wc * bc)
    vb = jnp.mean(bc * bc)
    P = wc * gamma
    Q = bc * gamma
    scal = jnp.broadcast_to(jnp.stack([vw, cwb, vb])[None, :], (D, 3))
    params = jnp.concatenate([P[:, None], Q[:, None], beta[:, None], scal],
                             axis=1)                              # (D, 6)

    grid = (B, S_pad // s_tile)
    out_t = pl.pallas_call(
        functools.partial(_vol_embed_kernel, lookback=L, s_tile=s_tile, win=win),
        out_shape=jax.ShapeDtypeStruct((B, D, S_pad), jnp.float32),
        grid_spec=pltpu.PrefetchScalarGridSpec(
            num_scalar_prefetch=0,
            grid=grid,
            in_specs=[
                # One padded price row per batch; constant across the inner S
                # axis -> fetched once per b, stays VMEM-resident.
                pl.BlockSpec((1, 1, t_xp), lambda bi, si: (bi, 0, 0)),
                # Single packed parameter block, constant across the grid.
                pl.BlockSpec((D, 6), lambda bi, si: (0, 0)),
            ],
            # Transposed, lane-dense output: last dim s_tile (multiple of 128).
            out_specs=pl.BlockSpec((1, D, s_tile), lambda bi, si: (bi, 0, si)),
        ),
        compiler_params=pltpu.CompilerParams(
            dimension_semantics=("parallel", "parallel")),
    )(xp3, params)

    # Layout glue only: drop S padding, move D back to the last axis.
    return jnp.transpose(out_t[:, :, :S], (0, 2, 1))              # (B, S, D)


@functools.partial(jax.jit, static_argnames="lookback")
def volatility_embedding(x_close, w, b, gamma, beta, *, lookback=11):
    """PyTorch-equivalent output (B, S, lookback, D).

    Axis 2 is an exact broadcast of the compact result; it is the final op so
    it fuses to a view under jit. Consumers that can index the compact
    (B, S, D) tensor should call volatility_embedding_compact directly and
    avoid the lookback-x output traffic.
    """
    out = volatility_embedding_compact(x_close, w, b, gamma, beta,
                                       lookback=lookback)
    B, S, D = out.shape
    return jnp.broadcast_to(out[:, :, None, :], (B, S, lookback, D))


def _reference(x_close, w, b, gamma, beta, lookback):
    """Pure-JAX re-implementation of the PyTorch forward (for validation)."""
    B, T, _ = x_close.shape
    S = T - lookback + 1
    diff = jnp.abs(x_close[:, 1:, 0] - x_close[:, :-1, 0])        # (B, T-1)
    returns = jnp.pad(diff, ((0, 0), (1, 0)))                     # (B, T)
    idx = jnp.arange(S)[:, None] + jnp.arange(lookback)[None, :]
    win = returns[:, idx]                                         # (B, S, L)
    vol = jnp.std(win, axis=-1, ddof=1)                           # unbiased like torch
    y = vol[:, :, None] * w[None, None, :] + b[None, None, :]
    mu = y.mean(-1, keepdims=True)
    var = ((y - mu) ** 2).mean(-1, keepdims=True)
    y = (y - mu) / jnp.sqrt(var + LN_EPS) * gamma + beta
    return jnp.broadcast_to(y[:, :, None, :], (B, S, lookback, w.shape[0]))


if __name__ == "__main__":
    def run_case(key, B, T, D, L):
        kx, kw, kb, kg, kbt = jax.random.split(key, 5)
        x_close = jnp.cumsum(0.1 * jax.random.normal(kx, (B, T, 1), jnp.float32),
                             axis=1) + 1.0
        w = 0.5 * jax.random.normal(kw, (D,), jnp.float32)   # nn.Linear(1, D).weight
        b = 0.1 * jax.random.normal(kb, (D,), jnp.float32)   # nn.Linear(1, D).bias
        gamma = 1.0 + 0.1 * jax.random.normal(kg, (D,), jnp.float32)
        beta = 0.05 * jax.random.normal(kbt, (D,), jnp.float32)

        out = jax.block_until_ready(
            volatility_embedding(x_close, w, b, gamma, beta, lookback=L))
        ref = _reference(x_close, w, b, gamma, beta, L)
        assert out.shape == (B, T - L + 1, L, D), out.shape
        err = float(jnp.abs(out - ref).max())
        assert jnp.allclose(out, ref, atol=1e-4, rtol=1e-4), err

    key = jax.random.PRNGKey(0)
    k1, k2 = jax.random.split(key)
    run_case(k1, B=2, T=24, D=32, L=11)    # single S-tile
    run_case(k2, B=1, T=300, D=16, L=11)   # multi S-tile grid path
    print("KERNEL_OK")
</pallas_src>

<mosaic_0001>
module attributes {stable_mosaic.version = 11 : i64} {
  func.func @_vol_embed_kernel(%arg0: i32, %arg1: i32, %arg2: memref<1x1x256xf32, #tpu.memory_space<vmem>>, %arg3: memref<32x6xf32, #tpu.memory_space<vmem>>, %arg4: memref<1x32x128xf32, #tpu.memory_space<vmem>>) attributes {dimension_semantics = [#tpu.dimension_semantics<parallel>, #tpu.dimension_semantics<parallel>], iteration_bounds = array<i64: 2, 1>, scalar_prefetch = 0 : i64, scratch_operands = 0 : i64, tpu.core_type = #tpu.core_type<tc>, window_params = [{transform_indices = @transform_0, window_bounds = array<i64: 1, 1, 256>}, {pipeline_mode = #tpu.pipeline_mode<synchronous>, transform_indices = @transform_1, window_bounds = array<i64: 32, 6>}, {transform_indices = @transform_2, window_bounds = array<i64: 1, 32, 128>}]} {
    %c128_i32 = arith.constant 128 : i32
    %0 = arith.muli %arg1, %c128_i32 : i32
    %1 = tpu.assume_multiple %0, 128 : i32
    %c0 = arith.constant 0 : index
    %c0_0 = arith.constant 0 : index
    %2 = arith.index_cast %1 : i32 to index
    %3 = vector.load %arg2[%c0, %c0_0, %2] : memref<1x1x256xf32, #tpu.memory_space<vmem>>, vector<1x1x256xf32>
    %c255_i32 = arith.constant 255 : i32
    %4 = tpu.dynamic_rotate %3 by %c255_i32 dim 2 : vector<1x1x256xf32>, i32 -> vector<1x1x256xf32>
    %5 = arith.subf %4, %3 : vector<1x1x256xf32>
    %6 = math.absf %5 : vector<1x1x256xf32>
    %7 = vector.extract_strided_slice %6 {offsets = [0, 0, 0], sizes = [1, 1, 128], strides = [1, 1, 1]} : vector<1x1x256xf32> to vector<1x1x128xf32>
    %cst = arith.constant dense<0.000000e+00> : vector<1x1xf32>
    %8 = vector.multi_reduction <add>, %7, %cst [2] : vector<1x1x128xf32> to vector<1x1xf32>
    %9 = vector.shape_cast %8 : vector<1x1xf32> to vector<1x1x1xf32>
    %cst_1 = arith.constant 1.280000e+02 : f32
    %10 = vector.broadcast %cst_1 : f32 to vector<1x1x1xf32>
    %11 = arith.divf %9, %10 : vector<1x1x1xf32>
    %12 = vector.broadcast %11 : vector<1x1x1xf32> to vector<1x1x256xf32>
    %13 = arith.subf %6, %12 : vector<1x1x256xf32>
    %14 = arith.mulf %13, %13 : vector<1x1x256xf32>
    %c255_i32_2 = arith.constant 255 : i32
    %15 = tpu.dynamic_rotate %13 by %c255_i32_2 dim 2 : vector<1x1x256xf32>, i32 -> vector<1x1x256xf32>
    %16 = arith.addf %13, %15 : vector<1x1x256xf32>
    %17 = arith.mulf %15, %15 : vector<1x1x256xf32>
    %18 = arith.addf %14, %17 : vector<1x1x256xf32>
    %c254_i32 = arith.constant 254 : i32
    %19 = tpu.dynamic_rotate %13 by %c254_i32 dim 2 : vector<1x1x256xf32>, i32 -> vector<1x1x256xf32>
    %20 = arith.addf %16, %19 : vector<1x1x256xf32>
    %21 = arith.mulf %19, %19 : vector<1x1x256xf32>
    %22 = arith.addf %18, %21 : vector<1x1x256xf32>
    %c253_i32 = arith.constant 253 : i32
    %23 = tpu.dynamic_rotate %13 by %c253_i32 dim 2 : vector<1x1x256xf32>, i32 -> vector<1x1x256xf32>
    %24 = arith.addf %20, %23 : vector<1x1x256xf32>
    %25 = arith.mulf %23, %23 : vector<1x1x256xf32>
    %26 = arith.addf %22, %25 : vector<1x1x256xf32>
    %c252_i32 = arith.constant 252 : i32
    %27 = tpu.dynamic_rotate %13 by %c252_i32 dim 2 : vector<1x1x256xf32>, i32 -> vector<1x1x256xf32>
    %28 = arith.addf %24, %27 : vector<1x1x256xf32>
    %29 = arith.mulf %27, %27 : vector<1x1x256xf32>
    %30 = arith.addf %26, %29 : vector<1x1x256xf32>
    %c251_i32 = arith.constant 251 : i32
    %31 = tpu.dynamic_rotate %13 by %c251_i32 dim 2 : vector<1x1x256xf32>, i32 -> vector<1x1x256xf32>
    %32 = arith.addf %28, %31 : vector<1x1x256xf32>
    %33 = arith.mulf %31, %31 : vector<1x1x256xf32>
    %34 = arith.addf %30, %33 : vector<1x1x256xf32>
    %c250_i32 = arith.constant 250 : i32
    %35 = tpu.dynamic_rotate %13 by %c250_i32 dim 2 : vector<1x1x256xf32>, i32 -> vector<1x1x256xf32>
    %36 = arith.addf %32, %35 : vector<1x1x256xf32>
    %37 = arith.mulf %35, %35 : vector<1x1x256xf32>
    %38 = arith.addf %34, %37 : vector<1x1x256xf32>
    %c249_i32 = arith.constant 249 : i32
    %39 = tpu.dynamic_rotate %13 by %c249_i32 dim 2 : vector<1x1x256xf32>, i32 -> vector<1x1x256xf32>
    %40 = arith.addf %36, %39 : vector<1x1x256xf32>
    %41 = arith.mulf %39, %39 : vector<1x1x256xf32>
    %42 = arith.addf %38, %41 : vector<1x1x256xf32>
    %c248_i32 = arith.constant 248 : i32
    %43 = tpu.dynamic_rotate %13 by %c248_i32 dim 2 : vector<1x1x256xf32>, i32 -> vector<1x1x256xf32>
    %44 = arith.addf %40, %43 : vector<1x1x256xf32>
    %45 = arith.mulf %43, %43 : vector<1x1x256xf32>
    %46 = arith.addf %42, %45 : vector<1x1x256xf32>
    %c247_i32 = arith.constant 247 : i32
    %47 = tpu.dynamic_rotate %13 by %c247_i32 dim 2 : vector<1x1x256xf32>, i32 -> vector<1x1x256xf32>
    %48 = arith.addf %44, %47 : vector<1x1x256xf32>
    %49 = arith.mulf %47, %47 : vector<1x1x256xf32>
    %50 = arith.addf %46, %49 : vector<1x1x256xf32>
    %c246_i32 = arith.constant 246 : i32
    %51 = tpu.dynamic_rotate %13 by %c246_i32 dim 2 : vector<1x1x256xf32>, i32 -> vector<1x1x256xf32>
    %52 = arith.addf %48, %51 : vector<1x1x256xf32>
    %53 = arith.mulf %51, %51 : vector<1x1x256xf32>
    %54 = arith.addf %50, %53 : vector<1x1x256xf32>
    %55 = arith.mulf %52, %52 : vector<1x1x256xf32>
    %cst_3 = arith.constant 0.0909090936 : f32
    %56 = vector.broadcast %cst_3 : f32 to vector<1x1x256xf32>
    %57 = arith.mulf %55, %56 : vector<1x1x256xf32>
    %58 = arith.subf %54, %57 : vector<1x1x256xf32>
    %cst_4 = arith.constant 1.000000e-01 : f32
    %59 = vector.broadcast %cst_4 : f32 to vector<1x1x256xf32>
    %60 = arith.mulf %58, %59 : vector<1x1x256xf32>
    %61 = vector.extract_strided_slice %60 {offsets = [0, 0, 0], sizes = [1, 1, 128], strides = [1, 1, 1]} : vector<1x1x256xf32> to vector<1x1x128xf32>
    %cst_5 = arith.constant 0.000000e+00 : f32
    %62 = vector.broadcast %cst_5 : f32 to vector<1x1x128xf32>
    %63 = arith.maximumf %61, %62 : vector<1x1x128xf32>
    %64 = math.sqrt %63 : vector<1x1x128xf32>
    %c0_6 = arith.constant 0 : index
    %c0_7 = arith.constant 0 : index
    %65 = vector.load %arg3[%c0_6, %c0_7] : memref<32x6xf32, #tpu.memory_space<vmem>>, vector<32x1xf32>
    %66 = vector.shape_cast %65 : vector<32x1xf32> to vector<1x32x1xf32>
    %c0_8 = arith.constant 0 : index
    %c1 = arith.constant 1 : index
    %67 = vector.load %arg3[%c0_8, %c1] : memref<32x6xf32, #tpu.memory_space<vmem>>, vector<32x1xf32>
    %68 = vector.shape_cast %67 : vector<32x1xf32> to vector<1x32x1xf32>
    %c0_9 = arith.constant 0 : index
    %c2 = arith.constant 2 : index
    %69 = vector.load %arg3[%c0_9, %c2] : memref<32x6xf32, #tpu.memory_space<vmem>>, vector<32x1xf32>
    %70 = vector.shape_cast %69 : vector<32x1xf32> to vector<1x32x1xf32>
    %c0_10 = arith.constant 0 : index
    %c3 = arith.constant 3 : index
    %71 = vector.load %arg3[%c0_10, %c3] : memref<32x6xf32, #tpu.memory_space<vmem>>, vector<1x1xf32>
    %72 = vector.shape_cast %71 : vector<1x1xf32> to vector<1x1x1xf32>
    %c0_11 = arith.constant 0 : index
    %c4 = arith.constant 4 : index
    %73 = vector.load %arg3[%c0_11, %c4] : memref<32x6xf32, #tpu.memory_space<vmem>>, vector<1x1xf32>
    %74 = vector.shape_cast %73 : vector<1x1xf32> to vector<1x1x1xf32>
    %c0_12 = arith.constant 0 : index
    %c5 = arith.constant 5 : index
    %75 = vector.load %arg3[%c0_12, %c5] : memref<32x6xf32, #tpu.memory_space<vmem>>, vector<1x1xf32>
    %76 = vector.shape_cast %75 : vector<1x1xf32> to vector<1x1x1xf32>
    %77 = arith.mulf %64, %64 : vector<1x1x128xf32>
    %78 = vector.broadcast %72 : vector<1x1x1xf32> to vector<1x1x128xf32>
    %79 = arith.mulf %77, %78 : vector<1x1x128xf32>
    %cst_13 = arith.constant 2.000000e+00 : f32
    %80 = vector.broadcast %cst_13 : f32 to vector<1x1x128xf32>
    %81 = arith.mulf %80, %64 : vector<1x1x128xf32>
    %82 = vector.broadcast %74 : vector<1x1x1xf32> to vector<1x1x128xf32>
    %83 = arith.mulf %81, %82 : vector<1x1x128xf32>
    %84 = arith.addf %79, %83 : vector<1x1x128xf32>
    %85 = vector.broadcast %76 : vector<1x1x1xf32> to vector<1x1x128xf32>
    %86 = arith.addf %84, %85 : vector<1x1x128xf32>
    %cst_14 = arith.constant 9.99999974E-6 : f32
    %87 = vector.broadcast %cst_14 : f32 to vector<1x1x128xf32>
    %88 = arith.addf %86, %87 : vector<1x1x128xf32>
    %89 = math.rsqrt %88 : vector<1x1x128xf32>
    %90 = arith.mulf %64, %89 : vector<1x1x128xf32>
    %91 = vector.broadcast %90 : vector<1x1x128xf32> to vector<1x32x128xf32>
    %92 = vector.broadcast %66 : vector<1x32x1xf32> to vector<1x32x128xf32>
    %93 = arith.mulf %91, %92 : vector<1x32x128xf32>
    %94 = vector.broadcast %89 : vector<1x1x128xf32> to vector<1x32x128xf32>
    %95 = vector.broadcast %68 : vector<1x32x1xf32> to vector<1x32x128xf32>
    %96 = arith.mulf %94, %95 : vector<1x32x128xf32>
    %97 = arith.addf %93, %96 : vector<1x32x128xf32>
    %98 = vector.broadcast %70 : vector<1x32x1xf32> to vector<1x32x128xf32>
    %99 = arith.addf %97, %98 : vector<1x32x128xf32>
    %c0_15 = arith.constant 0 : index
    %c0_16 = arith.constant 0 : index
    %c0_17 = arith.constant 0 : index
    %100 = vector.load %arg4[%c0_15, %c0_16, %c0_17] : memref<1x32x128xf32, #tpu.memory_space<vmem>>, vector<1x32x128xf32>
    tpu.vector_store %arg4[%c0_15, %c0_16, %c0_17], %99 {strides = array<i32>} : memref<1x32x128xf32, #tpu.memory_space<vmem>>, vector<1x32x128xf32>,
    return
  }
  func.func @transform_0(%arg0: i32, %arg1: i32) -> (i32, i32, i32) {
    %c0_i32 = arith.constant 0 : i32
    %c0_i32_0 = arith.constant 0 : i32
    %c0_i32_1 = arith.constant 0 : i32
    return %arg0, %c0_i32, %c0_i32_0 : i32, i32, i32
  }
  func.func @transform_1(%arg0: i32, %arg1: i32) -> (i32, i32) {
    %c0_i32 = arith.constant 0 : i32
    %c0_i32_0 = arith.constant 0 : i32
    %c0_i32_1 = arith.constant 0 : i32
    return %c0_i32, %c0_i32_0 : i32, i32
  }
  func.func @transform_2(%arg0: i32, %arg1: i32) -> (i32, i32, i32) {
    %c0_i32 = arith.constant 0 : i32
    %c0_i32_0 = arith.constant 0 : i32
    return %arg0, %c0_i32, %arg1 : i32, i32, i32
  }
}

</mosaic_0001>

<bundles_post_ra>
// kernel: volatility_embedding.1
= control target key start
LH: loop header
LB: loop body
LE: loop exit
PB: predicated region body
PF: predicated region fallthrough
CT: control target
= control target key end

     0   :  { %s604_s9 = smov 0   ;;  %s606_s10 = smov 0   ;;  %s694_s0 = inlined_call_operand.vmem [shape: f32[2,1,256], index: 0, kind: input, shape index: {}]   ;;  %s695_s1 = inlined_call_operand.vmem [shape: f32[32,6], index: 1, kind: input, shape index: {}]   ;;  %s696_s2 = inlined_call_operand.vmem [shape: f32[2,32,128], index: 2, kind: output, shape index: {}]  }
   0x1   :  { %s608_s11 = smov 0  }
   0x2 LB: > { %s24_s12 = sadd.s32 1, %s567_s10  ;;  %p489_p0 = scmp.ge.s32.totalorder %s571_s11, 1  ;;  %s571_s11 = sphi %s608_s11, %s12_s11   ;;  %s567_s10 = sphi %s606_s10, %s698_s10   ;;  %s563_s9 = sphi %s604_s9, %s697_s9  }
   0x3   : > { %p26_p1 = scmp.ge.s32.totalorder %s24_s12, 2  ;;  %p125_p2 = scmp.lt.s32.totalorder %s571_s11, 3 }
   0x5   : > { %s700_s12 = smov (%p26_p1, %s24_s12), 0  ;;  %p126_p3 = pnand %p489_p0, %p125_p2 }
   0x6   : > { %p149_p4 = scmp.lt.s32.totalorder (!%p126_p3), %s563_s9, 1  ;;  %v167_v0 = vlaneseq (!%p126_p3)  ;;  %s573_s17 = smov (!%p126_p3), 127   ;;  %vm190_vm1 = vcmask (!%p126_p3), 1040384   ;;  %v574_v14 = vmov (!%p126_p3), 4   ;;  %v575_v15 = vmov (!%p126_p3), 3   ;;  %v301_v25 = vld [vmem:[%s695_s1 + $0x8] sm:$0xff] (!%p126_p3) }
   0x7   : > { %129 = sbr.rel (%p126_p3) target bundleno = 507 (0x1fb), region = 28  ;;  %537 = vset.pattern.permute.xlu1 (!%p126_p3), %v574_v14  ;;  %536 = vset.pattern.permute.xlu0 (!%p126_p3), %v575_v15  ;;  %s576_s18 = smov (!%p126_p3), 126   ;;  %v304_v23 = vld [vmem:[%s695_s1] sm:$0x1] (!%p126_p3)  ;;  %v585_v24 = vmov (!%p126_p3), 5   ;;  %v586_v26 = vmov (!%p126_p3), 0  }
   0x8   : > { %v168_v1 = vshrl.u32 (!%p126_p3), %v167_v0, 7  ;;  %v631_v7 = vand.u32 (!%p126_p3), 127, %v167_v0  ;;  %s577_s19 = smov (!%p126_p3), 125   ;;  %s578_s20 = smov (!%p126_p3), 124   ;;  %v302_v27 = vld [vmem:[%s695_s1 + $0x10] sm:$0xff] (!%p126_p3)  ;;  %v300_v28 = vld [vmem:[%s695_s1] sm:$0xff] (!%p126_p3) }
   0x9   : > { %s579_s21 = smov (!%p126_p3), 123   ;;  %s580_s22 = smov (!%p126_p3), 122   ;;  %v303_v29 = vld [vmem:[%s695_s1 + $0x18] sm:$0xff] (!%p126_p3)  ;;  %v587_v30 = vmov (!%p126_p3), 1   ;;  %v588_v31 = vmov (!%p126_p3), 2  }
   0xa   : > { %v625_v2 = vsub.s32 (!%p126_p3), 0, %v168_v1  ;;  %v173_v3 = vsub.s32 (!%p126_p3), 1, %v168_v1  ;;  %vm183_vm0 = vcmp.lt.s32.totalorder (!%p126_p3), %v631_v7, 127  ;;  %s581_s23 = smov (!%p126_p3), 121   ;;  %s582_s24 = smov (!%p126_p3), 120   ;;  %vm211_vm2 = vcmp.lt.s32.totalorder (!%p126_p3), %v631_v7, 126 }
   0xb   : > { %s583_s25 = smov (!%p126_p3), 119   ;;  %s584_s26 = smov (!%p126_p3), 118   ;;  %vm220_vm3 = vcmp.lt.s32.totalorder (!%p126_p3), %v631_v7, 125  ;;  %vm229_vm4 = vcmp.lt.s32.totalorder (!%p126_p3), %v631_v7, 124  ;;  %vm238_vm5 = vcmp.lt.s32.totalorder (!%p126_p3), %v631_v7, 123  ;;  %vm247_vm6 = vcmp.lt.s32.totalorder (!%p126_p3), %v631_v7, 122 }
   0xc   : > { %vm256_vm7 = vcmp.lt.s32.totalorder (!%p126_p3), %v631_v7, 121  ;;  %vm265_vm8 = vcmp.lt.s32.totalorder (!%p126_p3), %v631_v7, 120  ;;  %vm274_vm9 = vcmp.lt.s32.totalorder (!%p126_p3), %v631_v7, 119  ;;  %vm283_vm10 = vcmp.lt.s32.totalorder (!%p126_p3), %v631_v7, 118 }
   0xe   : > { %s702_s9 = smov (!%p149_p4, %s563_s9), 1 }
   0xf   : > { %s490_s13 = sshll.u32 %s702_s9, 1 }
  0x10   : > { %s152_s16 = scalar_lea.vmem %s694_s0, %s490_s13  ;;  %s495_s13 = sshll.u32 %s702_s9, 5 }
  0x11   : > { %v165_v4 = vld [vmem:[%s152_s16] sm:$0x3]  ;;  %s160_s16 = scalar_lea.vmem %s696_s2, %s495_s13 }
  0x12   : > { %v170_v5 = vrot.slane %v165_v4, %v625_v2  ;;  %v174_v6 = vrot.slane %v165_v4, %v173_v3 }
  0x14   : > { %177 = vrot.lane.b32.xlu0 %v170_v5, %s573_s17 }
  0x18   : > { %179 = vrot.lane.b32.xlu0 %v174_v6, %s573_s17 }
  0x86   : > { %v178_v8 = vpop.permute.xlu0 %177 }
  0x8a   : > { %v180_v9 = vpop.permute.xlu0 %179 }
  0x8b   : > { %v184_v10 = vsel %vm183_vm0, %v178_v8, %v180_v9  ;;  %v185_v16 = vsel %vm183_vm0, %v180_v9, %v178_v8 }
  0x8c   : > { %v186_v11 = vsub.f32 %v184_v10, %v170_v5  ;;  %v187_v17 = vsub.f32 %v185_v16, %v174_v6 }
  0x8e   : > { %v188_v12 = vand.u32 2147483647, %v186_v11  ;;  %v189_v19 = vand.u32 2147483647, %v187_v17 }
  0x90   : > { %v191_v13 = vsel %vm190_vm1, %v188_v12, 0.0 }
  0x91   : > { %192 = vadd.xlane.f32.xlu1 %v191_v13 }
 0x11e   : > { %v193_v18 = vpop.xlane.xlu1 %192 }
 0x11f   : > { %v195_v20 = vmul.f32 0.0078125, %v193_v18 }
 0x121   : > { %v638_v21 = vsub.f32 %v188_v12, %v195_v20  ;;  %v197_v22 = vsub.f32 %v189_v19, %v195_v20 }
 0x123   : > { %201 = vrot.lane.b32.xlu0 %v197_v22, %s573_s17  ;;  %199 = vrot.lane.b32.xlu1 %v638_v21, %s573_s17  ;;  %v198_v50 = vmul.f32 %v638_v21, %v638_v21 }
 0x127   : > { %207 = vrot.lane.b32.xlu0 %v638_v21, %s576_s18  ;;  %218 = vrot.lane.b32.xlu1 %v197_v22, %s577_s19 }
 0x12b   : > { %209 = vrot.lane.b32.xlu0 %v197_v22, %s576_s18  ;;  %227 = vrot.lane.b32.xlu1 %v197_v22, %s578_s20 }
 0x12f   : > { %216 = vrot.lane.b32.xlu0 %v638_v21, %s577_s19  ;;  %236 = vrot.lane.b32.xlu1 %v197_v22, %s579_s21 }
 0x133   : > { %225 = vrot.lane.b32.xlu0 %v638_v21, %s578_s20  ;;  %245 = vrot.lane.b32.xlu1 %v197_v22, %s580_s22 }
 0x137   : > { %234 = vrot.lane.b32.xlu0 %v638_v21, %s579_s21  ;;  %254 = vrot.lane.b32.xlu1 %v197_v22, %s581_s23 }
 0x13b   : > { %243 = vrot.lane.b32.xlu0 %v638_v21, %s580_s22  ;;  %263 = vrot.lane.b32.xlu1 %v197_v22, %s582_s24 }
 0x13f   : > { %252 = vrot.lane.b32.xlu0 %v638_v21, %s581_s23  ;;  %272 = vrot.lane.b32.xlu1 %v197_v22, %s583_s25 }
 0x143   : > { %261 = vrot.lane.b32.xlu0 %v638_v21, %s582_s24  ;;  %281 = vrot.lane.b32.xlu1 %v197_v22, %s584_s26 }
 0x147   : > { %270 = vrot.lane.b32.xlu0 %v638_v21, %s583_s25  ;;  %314 = vperm.xlu1 %537, %v304_v23  }
 0x14b   : > { %279 = vrot.lane.b32.xlu0 %v638_v21, %s584_s26  ;;  %538 = vset.pattern.permute.xlu1 %v585_v24 }
 0x14c   : > { %320 = vperm.xlu1 %538, %v304_v23  }
 0x14f   : > { %308 = vperm.xlu0 %536, %v304_v23  }
 0x150   : > { %540 = vset.pattern.permute.xlu1 %v586_v26 }
 0x151   : > { %338 = vperm.xlu1 %540, %v301_v25  }
 0x153   : > { %539 = vset.pattern.permute.xlu0 %v586_v26 }
 0x154   : > { %333 = vperm.xlu0 %539, %v300_v28  }
 0x155   : > { %343 = vperm.xlu1 %540, %v302_v27  }
 0x158   : > { %348 = vperm.xlu0 %539, %v303_v29  }
 0x159   : > { %541 = vset.pattern.permute.xlu1 %v587_v30 }
 0x15a   : > { %360 = vperm.xlu1 %541, %v300_v28  }
 0x15c   : > { %542 = vset.pattern.permute.xlu0 %v587_v30 }
 0x15d   : > { %364 = vperm.xlu0 %542, %v301_v25  }
 0x15e   : > { %368 = vperm.xlu1 %541, %v302_v27  }
 0x161   : > { %543 = vset.pattern.permute.xlu0 %v588_v31 }
 0x162   : > { %372 = vperm.xlu1 %541, %v303_v29   ;;  %384 = vperm.xlu0 %543, %v300_v28  }
 0x166   : > { %544 = vset.pattern.permute.xlu1 %v588_v31  ;;  %396 = vperm.xlu0 %543, %v303_v29  }
 0x167   : > { %388 = vperm.xlu1 %544, %v301_v25  }
 0x16b   : > { %392 = vperm.xlu1 %544, %v302_v27  }
 0x195   : > { %v202_v32 = vpop.permute.xlu0 %201  ;;  %v200_v33 = vpop.permute.xlu1 %199 }
 0x196   : > { %v203_v43 = vsel %vm183_vm0, %v200_v33, %v202_v32 }
 0x197   : > { %v204_v46 = vadd.f32 %v203_v43, %v638_v21  ;;  %v205_v47 = vmul.f32 %v203_v43, %v203_v43 }
 0x199   : > { %v208_v34 = vpop.permute.xlu0 %207  ;;  %v219_v35 = vpop.permute.xlu1 %218  ;;  %v206_v54 = vadd.f32 %v205_v47, %v198_v50 }
 0x19d   : > { %v210_v36 = vpop.permute.xlu0 %209  ;;  %v228_v37 = vpop.permute.xlu1 %227 }
 0x19e   : > { %v212_v45 = vsel %vm211_vm2, %v208_v34, %v210_v36 }
 0x19f   : > { %v213_v51 = vadd.f32 %v212_v45, %v204_v46  ;;  %v214_v52 = vmul.f32 %v212_v45, %v212_v45 }
 0x1a1   : > { %v217_v38 = vpop.permute.xlu0 %216  ;;  %v237_v39 = vpop.permute.xlu1 %236  ;;  %v215_v60 = vadd.f32 %v214_v52, %v206_v54 }
 0x1a2   : > { %v221_v49 = vsel %vm220_vm3, %v217_v38, %v219_v35 }
 0x1a3   : > { %v222_v55 = vadd.f32 %v221_v49, %v213_v51  ;;  %v223_v56 = vmul.f32 %v221_v49, %v221_v49 }
 0x1a5   : > { %v226_v40 = vpop.permute.xlu0 %225  ;;  %v246_v41 = vpop.permute.xlu1 %245  ;;  %v224_v0 = vadd.f32 %v223_v56, %v215_v60 }
 0x1a6   : > { %v230_v53 = vsel %vm229_vm4, %v226_v40, %v228_v37 }
 0x1a7   : > { %v231_v61 = vadd.f32 %v230_v53, %v222_v55  ;;  %v232_v62 = vmul.f32 %v230_v53, %v230_v53 }
 0x1a9   : > { %v235_v42 = vpop.permute.xlu0 %234  ;;  %v255_v44 = vpop.permute.xlu1 %254  ;;  %v233_v6 = vadd.f32 %v232_v62, %v224_v0 }
 0x1aa   : > { %v239_v59 = vsel %vm238_vm5, %v235_v42, %v237_v39 }
 0x1ab   : > { %v240_v1 = vadd.f32 %v239_v59, %v231_v61  ;;  %v241_v3 = vmul.f32 %v239_v59, %v239_v59 }
 0x1ad   : > { %v244_v48 = vpop.permute.xlu0 %243  ;;  %v264_v57 = vpop.permute.xlu1 %263  ;;  %v242_v12 = vadd.f32 %v241_v3, %v233_v6 }
 0x1ae   : > { %v248_v63 = vsel %vm247_vm6, %v244_v48, %v246_v41 }
 0x1af   : > { %v249_v8 = vadd.f32 %v248_v63, %v240_v1  ;;  %v250_v9 = vmul.f32 %v248_v63, %v248_v63 }
 0x1b1   : > { %v253_v58 = vpop.permute.xlu0 %252  ;;  %v273_v10 = vpop.permute.xlu1 %272  ;;  %v251_v17 = vadd.f32 %v250_v9, %v242_v12 }
 0x1b2   : > { %v257_v5 = vsel %vm256_vm7, %v253_v58, %v255_v44 }
 0x1b3   : > { %v258_v13 = vadd.f32 %v257_v5, %v249_v8  ;;  %v259_v14 = vmul.f32 %v257_v5, %v257_v5 }
 0x1b5   : > { %v262_v4 = vpop.permute.xlu0 %261  ;;  %v260_v20 = vadd.f32 %v259_v14, %v251_v17  ;;  %v282_v21 = vpop.permute.xlu1 %281 }
 0x1b6   : > { %v266_v11 = vsel %vm265_vm8, %v262_v4, %v264_v57 }
 0x1b7   : > { %v267_v18 = vadd.f32 %v266_v11, %v258_v13  ;;  %v268_v19 = vmul.f32 %v266_v11, %v266_v11 }
 0x1b9   : > { %v271_v15 = vpop.permute.xlu0 %270  ;;  %v269_v26 = vadd.f32 %v268_v19, %v260_v20 }
 0x1ba   : > { %v275_v16 = vsel %vm274_vm9, %v271_v15, %v273_v10 }
 0x1bb   : > { %v276_v22 = vadd.f32 %v275_v16, %v267_v18  ;;  %v277_v23 = vmul.f32 %v275_v16, %v275_v16 }
 0x1bd   : > { %v280_v24 = vpop.permute.xlu0 %279  ;;  %v278_v29 = vadd.f32 %v277_v23, %v269_v26 }
 0x1be   : > { %v284_v25 = vsel %vm283_vm10, %v280_v24, %v282_v21 }
 0x1bf   : > { %v285_v27 = vadd.f32 %v284_v25, %v276_v22  ;;  %v286_v28 = vmul.f32 %v284_v25, %v284_v25 }
 0x1c1   : > { %v288_v30 = vmul.f32 %v285_v27, %v285_v27  ;;  %v287_v31 = vadd.f32 %v286_v28, %v278_v29 }
 0x1c3   : > { %v289_v32 = vmul.f32 0.09090909, %v288_v30 }
 0x1c5   : > { %v290_v33 = vsub.f32 %v287_v31, %v289_v32 }
 0x1c6   : > { %v315_v35 = vpop.permute.xlu1 %314 }
 0x1c7   : > { %v291_v34 = vmul.f32 0.1, %v290_v33 }
 0x1c9   : > { %v292_v36 = vmax.f32 %v291_v34, 0.0 }
 0x1cb   : > { %545 = vrsqrt.f32 %v292_v36  ;;  %v321_v37 = vpop.permute.xlu1 %320  ;;  %vm295_vm11 = vcmp.eq.f32.partialorder %v292_v36, inf  ;;  %v298_v40 = vand.u32 2147483648, %v292_v36  ;;  %vm297_vm12 = vcmp.eq.f32.partialorder %v292_v36, 0.0 }
 0x1ce   : > { %v309_v43 = vpop.permute.xlu0 %308 }
 0x1d0   : > { %v339_v7 = vpop.permute.xlu1 %338 }
 0x1d3   : > { %v334_v52 = vpop.permute.xlu0 %333 }
 0x1d4   : > { %v344_v45 = vpop.permute.xlu1 %343 }
 0x1d5   : > { %v546_v38 = vpop.eup %545 }
 0x1d6   : > { %v294_v39 = vmul.f32 %v546_v38, %v292_v36 }
 0x1d7   : > { %v349_v55 = vpop.permute.xlu0 %348 }
 0x1d8   : > { %v296_v41 = vsel %vm295_vm11, %v292_v36, %v294_v39 }
 0x1d9   : > { %v299_v42 = vsel %vm297_vm12, %v298_v40, %v296_v41  ;;  %v361_v51 = vpop.permute.xlu1 %360 }
 0x1da   : > { %v312_v44 = vmul.f32 2.0, %v299_v42  ;;  %v305_v46 = vmul.f32 %v299_v42, %v299_v42 }
 0x1dc   : > { %v317_v47 = vmul.f32 %v315_v35, %v312_v44  ;;  %v311_v48 = vmul.f32 %v309_v43, %v305_v46  ;;  %v365_v56 = vpop.permute.xlu0 %364 }
 0x1dd   : > { %v369_v54 = vpop.permute.xlu1 %368 }
 0x1de   : > { %v318_v49 = vadd.f32 %v317_v47, %v311_v48 }
 0x1e0   : > { %v323_v50 = vadd.f32 %v321_v37, %v318_v49 }
 0x1e1   : > { %v373_v57 = vpop.permute.xlu1 %372  ;;  %v385_v61 = vpop.permute.xlu0 %384 }
 0x1e2   : > { %v324_v53 = vadd.f32 1e-05, %v323_v50 }
 0x1e4   : > { %547 = vrsqrt.f32 %v324_v53 }
 0x1e5   : > { %v397_v14 = vpop.permute.xlu0 %396 }
 0x1e6   : > { %v389_v62 = vpop.permute.xlu1 %388 }
 0x1ea   : > { %v393_v15 = vpop.permute.xlu1 %392 }
 0x1ee   : > { %v548_v58 = vpop.eup %547 }
 0x1ef   : > { %v358_v59 = vrot.slane %v548_v58, %v625_v2  ;;  %v326_v60 = vmul.f32 %v548_v58, %v299_v42 }
 0x1f1   : > { %v330_v63 = vrot.slane %v326_v60, %v625_v2  ;;  %v375_v0 = vmul.f32 %v361_v51, %v358_v59  ;;  %v377_v1 = vmul.f32 %v369_v54, %v358_v59  ;;  %v378_v3 = vmul.f32 %v373_v57, %v358_v59 }
 0x1f2   : > { %v376_v4 = vmul.f32 %v365_v56, %v358_v59 }
 0x1f3   : > { %v351_v5 = vmul.f32 %v334_v52, %v330_v63  ;;  %v354_v6 = vmul.f32 %v349_v55, %v330_v63  ;;  %v352_v8 = vmul.f32 %v339_v7, %v330_v63  ;;  %v353_v9 = vmul.f32 %v344_v45, %v330_v63 }
 0x1f5   : > { %v379_v10 = vadd.f32 %v375_v0, %v351_v5  ;;  %v380_v11 = vadd.f32 %v376_v4, %v352_v8  ;;  %v382_v12 = vadd.f32 %v378_v3, %v354_v6  ;;  %v381_v13 = vadd.f32 %v377_v1, %v353_v9 }
 0x1f7   : > { %v399_v2 = vadd.f32 %v385_v61, %v379_v10  ;;  %v400_v16 = vadd.f32 %v389_v62, %v380_v11  ;;  %v402_v17 = vadd.f32 %v397_v14, %v382_v12  ;;  %v401_v18 = vadd.f32 %v393_v15, %v381_v13 }
 0x1f9   : > { %403 = vst [vmem:[%s160_s16] sm:$0xff] %v399_v2  ;;  %404 = vst [vmem:[%s160_s16 + $0x8] sm:$0xff] %v400_v16 }
 0x1fa   : > { %406 = vst [vmem:[%s160_s16 + $0x18] sm:$0xff] %v402_v17  ;;  %405 = vst [vmem:[%s160_s16 + $0x10] sm:$0xff] %v401_v18 }
 0x1fb PF: > { %s12_s11 = sadd.s32 1, %s571_s11   ;;  %s697_s9 = smov %s567_s10 }
 0x1fc   : > { %p9_p5 = scmp.ge.s32.totalorder %s12_s11, 4   ;;  %s698_s10 = smov %s700_s12 }
 0x1fe   :  { %11 = sbr.rel (!%p9_p5) target bundleno = 2 (0x2), region = 59 }

</bundles_post_ra>
